<compile_context>
chip_gen: v6e
topology: v6e:2x2x1
jax: 0.10.0
libtpu: 0.0.40
codegen_flags: <defaults>
</compile_context>

<pallas_src>
import numpy as np
import jax
import jax.numpy as jnp
from jax.experimental import pallas as pl
from jax.experimental.pallas import tpu as pltpu

LANE = 128          # TPU lane width
TM_MAX = 1024       # row tile cap (multiple of 256 for v6e/v7x MXU, 128 for v5e)
SUBLANE_BF16 = 16   # bf16 sublane packing


# ----------------------------------------------------------------------------
# Slice bookkeeping (ported from the PyTorch module, no torch needed)
# ----------------------------------------------------------------------------
def get_t2m_slice(idx):
    if idx == 0:
        return [0, 1, 2, 3, 193, 194, 195, 259, 260, 261, 262]
    return [4 + (idx - 1) * 3, 4 + (idx - 1) * 3 + 1, 4 + (idx - 1) * 3 + 2,
            67 + (idx - 1) * 6, 67 + (idx - 1) * 6 + 1, 67 + (idx - 1) * 6 + 2,
            67 + (idx - 1) * 6 + 3, 67 + (idx - 1) * 6 + 4, 67 + (idx - 1) * 6 + 5,
            193 + idx * 3, 193 + idx * 3 + 1, 193 + idx * 3 + 2]


def get_part_slice(idx_list, func):
    result = []
    for idx in idx_list:
        result.extend(func(idx))
    return result


def _round_up(x, m):
    return ((x + m - 1) // m) * m


# ----------------------------------------------------------------------------
# Pallas kernel: out = x @ W + b
# x arrives f32 (cast to bf16 on the VPU here), W bf16, f32 accumulate + bias,
# store as bf16 (lane-dense 384-wide -> unmasked vst).
# ----------------------------------------------------------------------------
def pose_decoder_kernel(x_ref, w_ref, b_ref, o_ref):
    x = x_ref[...].astype(jnp.bfloat16)      # in-kernel cast: free under the DMA
    acc = jnp.dot(x, w_ref[...], preferred_element_type=jnp.float32)
    o_ref[...] = (acc + b_ref[...]).astype(o_ref.dtype)


def _pick_tm(M):
    """Row tile: big enough to amortize ~0.35us/step, multiple of 16 (bf16 sublanes).
    For M > TM_MAX keep >= 2 grid steps so the v7x megacore shards the row axis."""
    if M <= TM_MAX:
        return max(SUBLANE_BF16, _round_up(M, SUBLANE_BF16))
    return min(TM_MAX, _round_up(pl.cdiv(M, 2), 256))


def pose_decoder_forward(motion, w_comb, b_comb, output_dim, *, slice_output=True):
    """motion: [B, T, 8*D] float32 -> output [B, T, output_dim] float32.

    w_comb: [8*D, Np] with Np a multiple of 128 (zero-padded beyond output_dim),
    b_comb: [Np]. The *0.5 of the module is already folded into w_comb/b_comb.
    With slice_output=False the padded [B, T, Np] bf16 slab is returned so the
    trailing column-slice HBM pass can be deferred/fused into the consumer.
    """
    B, T, F = motion.shape
    Np = w_comb.shape[1]
    assert Np % LANE == 0
    M = B * T

    x = motion.reshape(M, F)                      # stays f32; no wrapper cast, no pad
    w = w_comb.astype(jnp.bfloat16)               # resident bf16 weight (384 KB)
    b = b_comb.reshape(1, Np).astype(jnp.float32)

    tm = _pick_tm(M)
    grid_m = pl.cdiv(M, tm)

    # Accurate advisory cost for XLA scheduling (actual kernel work & dtypes).
    cost = pl.CostEstimate(
        flops=2 * grid_m * tm * F * Np,
        transcendentals=0,
        bytes_accessed=M * F * 4 + F * Np * 2 + Np * 4 + M * Np * 2,
    )

    # Double-buffered footprint: x (f32) + out (bf16) tiles, weight/bias buffers,
    # plus slack for compiler-internal scratch. Well under every chip's limit.
    vmem_bytes = (2 * tm * F * 4 + 2 * tm * Np * 2
                  + 2 * F * Np * 2 + 2 * Np * 4)
    vmem_limit = min(max(2 * vmem_bytes, 16 * 1024 * 1024), 32 * 1024 * 1024)

    out = pl.pallas_call(
        pose_decoder_kernel,
        out_shape=jax.ShapeDtypeStruct((M, Np), jnp.bfloat16),
        grid_spec=pltpu.PrefetchScalarGridSpec(
            num_scalar_prefetch=0,
            grid=(grid_m,),
            in_specs=[
                pl.BlockSpec((tm, F), lambda i: (i, 0)),   # activation row tile (f32)
                pl.BlockSpec((F, Np), lambda i: (0, 0)),   # combined weight (resident)
                pl.BlockSpec((1, Np), lambda i: (0, 0)),   # combined bias (resident)
            ],
            out_specs=pl.BlockSpec((tm, Np), lambda i: (i, 0)),
        ),
        compiler_params=pltpu.CompilerParams(
            dimension_semantics=("parallel",),
            vmem_limit_bytes=vmem_limit,
        ),
        cost_estimate=cost,
    )(x, w, b)

    if not slice_output:
        return out.reshape(B, T, Np)
    return out[:, :output_dim].reshape(B, T, output_dim).astype(motion.dtype)


# ----------------------------------------------------------------------------
# Parameter construction (deterministic, synthetic)
# ----------------------------------------------------------------------------
def build_pose_decoder_params(latent_dim=64, output_dim=263, seed=0):
    func = get_t2m_slice
    # Order must match the forward pass chunk order of `motion`:
    part_slices = [
        get_part_slice([12, 15], func),           # head   <- motion[:, :, 0D:1D]
        get_part_slice([3, 6, 9], func),          # stem   <- 1D:2D
        get_part_slice([14, 17, 19, 21], func),   # larm   <- 2D:3D
        get_part_slice([13, 16, 18, 20], func),   # rarm   <- 3D:4D
        get_part_slice([2, 5, 8, 11], func),      # lleg   <- 4D:5D
        get_part_slice([1, 4, 7, 10], func),      # rleg   <- 5D:6D
        get_part_slice([0], func),                # root   <- 6D:7D
    ]
    body_slice = get_part_slice(list(range(22)), func)
    assert len(set(body_slice)) == output_dim

    key = jax.random.PRNGKey(seed)
    D = latent_dim
    raw = []  # (slice, W [out,in], b [out]) in torch Linear convention
    for sl in part_slices:
        key, kw, kb = jax.random.split(key, 3)
        W = jax.random.normal(kw, (len(sl), D), jnp.float32) * 0.05
        b = jax.random.normal(kb, (len(sl),), jnp.float32) * 0.05
        raw.append((sl, np.asarray(W), np.asarray(b)))
    key, kw, kb = jax.random.split(key, 3)
    W_body = np.asarray(jax.random.normal(kw, (len(body_slice), D), jnp.float32) * 0.05)
    b_body = np.asarray(jax.random.normal(kb, (len(body_slice),), jnp.float32) * 0.05)

    # Fold the per-part scatter + the /2 into one combined weight/bias, and
    # zero-pad the output columns up to a multiple of 128 (lane-dense stores).
    n_chunks = len(part_slices) + 1  # 7 parts + body = 8 chunks of D features
    Np = _round_up(output_dim, LANE)
    W_comb = np.zeros((n_chunks * D, Np), np.float32)
    b_comb = np.zeros((Np,), np.float32)
    for p, (sl, Wp, bp) in enumerate(raw):
        # Assignment is equivalent to the module's scatter because part slices are disjoint.
        W_comb[p * D:(p + 1) * D, sl] = Wp.T
        b_comb[sl] = bp
    W_comb[(n_chunks - 1) * D:, body_slice] += W_body.T
    b_add = np.zeros((Np,), np.float32)
    b_add[body_slice] = b_body
    b_comb += b_add

    # Fold the final "* 0.5" of the module into the parameters.
    W_comb *= 0.5
    b_comb *= 0.5

    return jnp.asarray(W_comb), jnp.asarray(b_comb), raw, (body_slice, W_body, b_body)


# ----------------------------------------------------------------------------
# Pure-JAX reference (explicit per-part scatter, mirrors the torch forward, f32)
# ----------------------------------------------------------------------------
def reference_forward(motion, raw_parts, body_pack, latent_dim, output_dim):
    B, T, _ = motion.shape
    D = latent_dim
    out = jnp.zeros((B, T, output_dim), motion.dtype)
    for p, (sl, Wp, bp) in enumerate(raw_parts):
        feat = motion[:, :, p * D:(p + 1) * D] @ jnp.asarray(Wp).T + jnp.asarray(bp)
        out = out.at[:, :, jnp.asarray(sl)].set(feat)
    body_slice, W_body, b_body = body_pack
    body_feat = motion[:, :, len(raw_parts) * D:] @ jnp.asarray(W_body).T + jnp.asarray(b_body)
    body_scatter = jnp.zeros((B, T, output_dim), motion.dtype)
    body_scatter = body_scatter.at[:, :, jnp.asarray(body_slice)].set(body_feat)
    return (out + body_scatter) / 2.0


if __name__ == "__main__":
    LATENT_DIM = 64
    OUTPUT_DIM = 263
    B, T = 2, 8

    W_comb, b_comb, raw_parts, body_pack = build_pose_decoder_params(
        latent_dim=LATENT_DIM, output_dim=OUTPUT_DIM, seed=0)

    key = jax.random.PRNGKey(0)
    motion = jax.random.normal(key, (B, T, 8 * LATENT_DIM), jnp.float32)

    out = pose_decoder_forward(motion, W_comb, b_comb, OUTPUT_DIM)
    out = jax.block_until_ready(out)

    ref = reference_forward(motion, raw_parts, body_pack, LATENT_DIM, OUTPUT_DIM)
    ref = jax.block_until_ready(ref)

    assert out.shape == (B, T, OUTPUT_DIM), out.shape
    np.testing.assert_allclose(np.asarray(out), np.asarray(ref), rtol=2e-2, atol=2e-2)
    print("KERNEL_OK")
</pallas_src>

<mosaic_0001>
module attributes {stable_mosaic.version = 11 : i64} {
  func.func @pose_decoder_kernel(%arg0: i32, %arg1: memref<16x512xf32, #tpu.memory_space<vmem>>, %arg2: memref<512x384xbf16, #tpu.memory_space<vmem>>, %arg3: memref<1x384xf32, #tpu.memory_space<vmem>>, %arg4: memref<16x384xbf16, #tpu.memory_space<vmem>>) attributes {dimension_semantics = [#tpu.dimension_semantics<parallel>], iteration_bounds = array<i64: 1>, scalar_prefetch = 0 : i64, scratch_operands = 0 : i64, tpu.core_type = #tpu.core_type<tc>, window_params = [{transform_indices = @transform_0, window_bounds = array<i64: 16, 512>}, {pipeline_mode = #tpu.pipeline_mode<synchronous>, transform_indices = @transform_1, window_bounds = array<i64: 512, 384>}, {pipeline_mode = #tpu.pipeline_mode<synchronous>, transform_indices = @transform_2, window_bounds = array<i64: 1, 384>}, {transform_indices = @transform_3, window_bounds = array<i64: 16, 384>}]} {
    %c0 = arith.constant 0 : index
    %c0_0 = arith.constant 0 : index
    %0 = vector.load %arg1[%c0, %c0_0] : memref<16x512xf32, #tpu.memory_space<vmem>>, vector<16x512xf32>
    %1 = arith.truncf %0 : vector<16x512xf32> to vector<16x512xbf16>
    %c0_1 = arith.constant 0 : index
    %c0_2 = arith.constant 0 : index
    %2 = vector.load %arg2[%c0_1, %c0_2] : memref<512x384xbf16, #tpu.memory_space<vmem>>, vector<512x384xbf16>
    %cst = arith.constant dense<0.000000e+00> : vector<16x384xf32>
    %3 = tpu.matmul %1, %2, %cst {dimension_numbers = #tpu.dot_dimension_numbers<[1], [0], [0], [1], [0, 0, 1, 1], [], []>} : vector<16x512xbf16>, vector<512x384xbf16>, vector<16x384xf32> -> vector<16x384xf32>
    %c0_3 = arith.constant 0 : index
    %c0_4 = arith.constant 0 : index
    %4 = vector.load %arg3[%c0_3, %c0_4] : memref<1x384xf32, #tpu.memory_space<vmem>>, vector<1x384xf32>
    %5 = vector.broadcast %4 : vector<1x384xf32> to vector<16x384xf32>
    %6 = arith.addf %3, %5 : vector<16x384xf32>
    %7 = arith.truncf %6 : vector<16x384xf32> to vector<16x384xbf16>
    %c0_5 = arith.constant 0 : index
    %c0_6 = arith.constant 0 : index
    %8 = vector.load %arg4[%c0_5, %c0_6] : memref<16x384xbf16, #tpu.memory_space<vmem>>, vector<16x384xbf16>
    tpu.vector_store %arg4[%c0_5, %c0_6], %7 {strides = array<i32>} : memref<16x384xbf16, #tpu.memory_space<vmem>>, vector<16x384xbf16>,
    return
  }
  func.func @transform_0(%arg0: i32) -> (i32, i32) {
    %c0_i32 = arith.constant 0 : i32
    %c0_i32_0 = arith.constant 0 : i32
    return %arg0, %c0_i32 : i32, i32
  }
  func.func @transform_1(%arg0: i32) -> (i32, i32) {
    %c0_i32 = arith.constant 0 : i32
    %c0_i32_0 = arith.constant 0 : i32
    %c0_i32_1 = arith.constant 0 : i32
    return %c0_i32, %c0_i32_0 : i32, i32
  }
  func.func @transform_2(%arg0: i32) -> (i32, i32) {
    %c0_i32 = arith.constant 0 : i32
    %c0_i32_0 = arith.constant 0 : i32
    %c0_i32_1 = arith.constant 0 : i32
    return %c0_i32, %c0_i32_0 : i32, i32
  }
  func.func @transform_3(%arg0: i32) -> (i32, i32) {
    %c0_i32 = arith.constant 0 : i32
    %c0_i32_0 = arith.constant 0 : i32
    return %arg0, %c0_i32 : i32, i32
  }
}

</mosaic_0001>

<bundles_post_ra>
// kernel: tpu_custom_call.1
= control target key start
LH: loop header
LB: loop body
LE: loop exit
PB: predicated region body
PF: predicated region fallthrough
CT: control target
= control target key end

     0   :  { %8 = vsyncpa [#allocation3], 0  ;;  %s1333_s0 = inlined_call_operand.hbm [shape: f32[16,512], index: 0, kind: input, shape index: {}]   ;;  %s1334_s1 = inlined_call_operand.hbm [shape: bf16[512,384], index: 1, kind: input, shape index: {}]   ;;  %s1335_s2 = inlined_call_operand.vmem [shape: f32[1,384], index: 2, kind: input, shape index: {}]   ;;  %s1336_s3 = inlined_call_operand.hbm [shape: bf16[16,384], index: 3, kind: output, shape index: {}]  }
   0x1   :  { %9 = vsyncpa [#allocation6], 0 }
   0x2   :  { %10 = vsyncpa [#allocation4], 0  ;;  %s1272_s12 = smov [#allocation2]  }
   0x3   :  { %s16_s13 = sshll.u32 %s1272_s12, 4  ;;  %s17_s13 = int_to_ptr.vmem [resolvable:$true] %s16_s13 }
   0x4   :  { %s1214_s14 = scalar_lea.vmem %s17_s13, 1024  ;;  %p1219_p1 = scmp.lt.s32.totalorder %s17_s13, %s17_s13 }
   0x5   :  { %p1215_p0 = scmp.ne.s32.totalorder %s17_s13, %s1214_s14  ;;  %p1220_p2 = scmp.lt.s32.totalorder %s1214_s14, %s1214_s14 }
   0x7   :  { %p1221_p3 = por %p1220_p2, %p1219_p1 }
   0x9   :  { %p1222_p4 = pnand %p1221_p3, %p1215_p0 }
   0xb   :  { %1225 = shalt.err (!%p1222_p4)
}
   0xc   :  { %s1273_s15 = smov 512   ;;  %s1274_s16 = smov 32  }
   0xd   :  { %22 = dma.hbm_to_vmem [thread:$0]  %s1333_s0, 1024, %s17_s13, [#allocation3], %s1273_s15, %s1273_s15, %s1274_s16  }
   0xe   :  { %s1275_s19 = smov [#allocation5]  }
   0xf   :  { %s28_s20 = sshll.u32 %s1275_s19, 4  ;;  %s29_s20 = int_to_ptr.vmem [resolvable:$true] %s28_s20 }
  0x10   :  { %s1234_s21 = scalar_lea.vmem %s29_s20, 12288  ;;  %p1239_p6 = scmp.lt.s32.totalorder %s29_s20, %s29_s20 }
  0x11   :  { %p1235_p5 = scmp.ne.s32.totalorder %s29_s20, %s1234_s21  ;;  %p1240_p7 = scmp.lt.s32.totalorder %s1234_s21, %s1234_s21 }
  0x13   :  { %p1241_p8 = por %p1240_p7, %p1239_p6 }
  0x15   :  { %p1242_p9 = pnand %p1241_p8, %p1235_p5 }
  0x17   :  { %1245 = shalt.err (!%p1242_p9)
}
  0x18   :  { %s1276_s22 = smov 192   ;;  %s1277_s23 = smov 12  }
  0x19   :  { %34 = dma.hbm_to_vmem [thread:$0]  %s1334_s1, 12288, %s29_s20, [#allocation6], %s1276_s22, %s1276_s22, %s1277_s23  }
  0x1a   :  { %1266 = dma.done.wait [#allocation3], 1024  }
  0x1b   :  { %1267 = vsyncadd [#allocation3], 4294966272 }
  0x1c   :  { %1268 = dma.done.wait [#allocation6], 12288  }
  0x1d   :  { %1269 = vsyncadd [#allocation6], 4294955008  ;;  %v1078_v0 = vld [vmem:[#allocation5 + $0xac] ss:$12 sps:$4 sm:$0xff]   ;;  %v1082_v2 = vld [vmem:[#allocation5 + $0xa8] ss:$12 sps:$4 sm:$0xff]  }
  0x1e   :  { %v1080_v1 = vld [vmem:[#allocation5 + $0x22c] ss:$12 sps:$4 sm:$0xff]   ;;  %713 = vmatprep.subr.bf16.mxu0 %v1078_v0  ;;  %v1083_v3 = vld [vmem:[#allocation5 + $0x228] ss:$12 sps:$4 sm:$0xff]   ;;  %v1088_v6 = vld [vmem:[#allocation5 + $0x90] ss:$12 sps:$4 sm:$0xff]  }
  0x1f   :  { %756 = vmatprep.subr.bf16.mxu1 %v1080_v1  ;;  %v1084_v4 = vld [vmem:[#allocation5 + $0x94] ss:$12 sps:$4 sm:$0xff]   ;;  %714 = vmatpush1.bf16.msra.mxu0 %v1082_v2  ;;  %v1089_v7 = vld [vmem:[#allocation5 + $0x210] ss:$12 sps:$4 sm:$0xff]   ;;  %v1094_v10 = vld [vmem:[#allocation5 + $0x78] ss:$12 sps:$4 sm:$0xff]  }
  0x20   :  { %757 = vmatpush1.bf16.msra.mxu1 %v1083_v3  ;;  %v1086_v5 = vld [vmem:[#allocation5 + $0x214] ss:$12 sps:$4 sm:$0xff]   ;;  %715 = vmatprep.subr.bf16.mxu0 %v1084_v4  ;;  %v1090_v8 = vld [vmem:[#allocation5 + $0x7c] ss:$12 sps:$4 sm:$0xff]   ;;  %v1095_v11 = vld [vmem:[#allocation5 + $0x1f8] ss:$12 sps:$4 sm:$0xff]  }
  0x21   :  { %758 = vmatprep.subr.bf16.mxu1 %v1086_v5  ;;  %v1092_v9 = vld [vmem:[#allocation5 + $0x1fc] ss:$12 sps:$4 sm:$0xff]   ;;  %v1096_v12 = vld [vmem:[#allocation5 + $0x64] ss:$12 sps:$4 sm:$0xff]   ;;  %v1100_v14 = vld [vmem:[#allocation5 + $0x60] ss:$12 sps:$4 sm:$0xff]  }
  0x22   :  { %v1098_v13 = vld [vmem:[#allocation5 + $0x1e4] ss:$12 sps:$4 sm:$0xff]   ;;  %v1101_v15 = vld [vmem:[#allocation5 + $0x1e0] ss:$12 sps:$4 sm:$0xff]   ;;  %v1106_v18 = vld [vmem:[#allocation5 + $0x48] ss:$12 sps:$4 sm:$0xff]  }
  0x23   :  { %716 = vmatpush1.bf16.msra.mxu0 %v1088_v6  ;;  %v1102_v16 = vld [vmem:[#allocation5 + $0x4c] ss:$12 sps:$4 sm:$0xff]   ;;  %v1107_v19 = vld [vmem:[#allocation5 + $0x1c8] ss:$12 sps:$4 sm:$0xff]   ;;  %v1112_v22 = vld [vmem:[#allocation5 + $0x30] ss:$12 sps:$4 sm:$0xff]  }
  0x24   :  { %759 = vmatpush1.bf16.msra.mxu1 %v1089_v7  ;;  %717 = vmatprep.subr.bf16.mxu0 %v1090_v8  ;;  %v1104_v17 = vld [vmem:[#allocation5 + $0x1cc] ss:$12 sps:$4 sm:$0xff]   ;;  %v1108_v20 = vld [vmem:[#allocation5 + $0x34] ss:$12 sps:$4 sm:$0xff]   ;;  %v1113_v23 = vld [vmem:[#allocation5 + $0x1b0] ss:$12 sps:$4 sm:$0xff]  }
  0x25   :  { %760 = vmatprep.subr.bf16.mxu1 %v1092_v9  ;;  %v1110_v21 = vld [vmem:[#allocation5 + $0x1b4] ss:$12 sps:$4 sm:$0xff]   ;;  %v1114_v24 = vld [vmem:[#allocation5 + $0x1c] ss:$12 sps:$4 sm:$0xff]   ;;  %v1118_v26 = vld [vmem:[#allocation5 + $0x18] ss:$12 sps:$4 sm:$0xff]  }
  0x26   :  { %v1116_v25 = vld [vmem:[#allocation5 + $0x19c] ss:$12 sps:$4 sm:$0xff]   ;;  %v1119_v27 = vld [vmem:[#allocation5 + $0x198] ss:$12 sps:$4 sm:$0xff]   ;;  %v1124_v30 = vld [vmem:[#allocation5] ss:$12 sps:$4 sm:$0xff]  }
  0x27   :  { %718 = vmatpush1.bf16.msra.mxu0 %v1094_v10  ;;  %v1120_v28 = vld [vmem:[#allocation5 + $0x4] ss:$12 sps:$4 sm:$0xff]   ;;  %v1125_v31 = vld [vmem:[#allocation5 + $0x180] ss:$12 sps:$4 sm:$0xff]   ;;  %v1130_v34 = vld [vmem:[#allocation5 + $0x168] ss:$12 sps:$4 sm:$0xff]  }
  0x28   :  { %761 = vmatpush1.bf16.msra.mxu1 %v1095_v11  ;;  %719 = vmatprep.subr.bf16.mxu0 %v1096_v12  ;;  %v1122_v29 = vld [vmem:[#allocation5 + $0x184] ss:$12 sps:$4 sm:$0xff]   ;;  %v1126_v32 = vld [vmem:[#allocation5 + $0x16c] ss:$12 sps:$4 sm:$0xff]   ;;  %v1131_v35 = vld [vmem:[#allocation5 + $0x2e8] ss:$12 sps:$4 sm:$0xff]  }
  0x29   :  { %762 = vmatprep.subr.bf16.mxu1 %v1098_v13  ;;  %v1128_v33 = vld [vmem:[#allocation5 + $0x2ec] ss:$12 sps:$4 sm:$0xff]   ;;  %v1132_v36 = vld [vmem:[#allocation5 + $0x154] ss:$12 sps:$4 sm:$0xff]   ;;  %v1136_v38 = vld [vmem:[#allocation5 + $0x150] ss:$12 sps:$4 sm:$0xff]  }
  0x2a   :  { %v1134_v37 = vld [vmem:[#allocation5 + $0x2d4] ss:$12 sps:$4 sm:$0xff]   ;;  %v1137_v39 = vld [vmem:[#allocation5 + $0x2d0] ss:$12 sps:$4 sm:$0xff]   ;;  %v1142_v42 = vld [vmem:[#allocation5 + $0x138] ss:$12 sps:$4 sm:$0xff]  }
  0x2b   :  { %720 = vmatpush1.bf16.msra.mxu0 %v1100_v14  ;;  %v1138_v40 = vld [vmem:[#allocation5 + $0x13c] ss:$12 sps:$4 sm:$0xff]   ;;  %v1143_v43 = vld [vmem:[#allocation5 + $0x2b8] ss:$12 sps:$4 sm:$0xff]   ;;  %v1148_v50 = vld [vmem:[#allocation5 + $0x120] ss:$12 sps:$4 sm:$0xff]  }
  0x2c   :  { %763 = vmatpush1.bf16.msra.mxu1 %v1101_v15  ;;  %721 = vmatprep.subr.bf16.mxu0 %v1102_v16  ;;  %v1140_v41 = vld [vmem:[#allocation5 + $0x2bc] ss:$12 sps:$4 sm:$0xff]   ;;  %v1144_v44 = vld [vmem:[#allocation5 + $0x124] ss:$12 sps:$4 sm:$0xff]   ;;  %v1149_v51 = vld [vmem:[#allocation5 + $0x2a0] ss:$12 sps:$4 sm:$0xff]  }
  0x2d   :  { %764 = vmatprep.subr.bf16.mxu1 %v1104_v17  ;;  %v1146_v45 = vld [vmem:[#allocation5 + $0x2a4] ss:$12 sps:$4 sm:$0xff]   ;;  %v45_v46 = vld [vmem:[#allocation2 + $0x8] sm:$0xff]  ;;  %v47_v48 = vld [vmem:[#allocation2 + $0x18] sm:$0xff] }
  0x2e   :  { %v49_v47 = vld [vmem:[#allocation2 + $0x28] sm:$0xff]  ;;  %v51_v49 = vld [vmem:[#allocation2 + $0x38] sm:$0xff]  ;;  %v1156_v58 = vld [vmem:[#allocation5 + $0xf4] ss:$12 sps:$4 sm:$0xff]  }
  0x2f   :  { %722 = vmatpush1.bf16.msra.mxu0 %v1106_v18  ;;  %v1150_v52 = vld [vmem:[#allocation5 + $0x10c] ss:$12 sps:$4 sm:$0xff]   ;;  %v1308_v53 = vpack.c.bf16 %v49_v47, %v45_v46  ;;  %v1310_v54 = vpack.c.bf16 %v51_v49, %v47_v48  ;;  %v1154_v56 = vld [vmem:[#allocation5 + $0x108] ss:$12 sps:$4 sm:$0xff]   ;;  %v1160_v60 = vld [vmem:[#allocation5 + $0xf0] ss:$12 sps:$4 sm:$0xff]  }
  0x30   :  { %765 = vmatpush1.bf16.msra.mxu1 %v1107_v19  ;;  %723 = vmatprep.subr.bf16.mxu0 %v1108_v20  ;;  %v1152_v55 = vld [vmem:[#allocation5 + $0x28c] ss:$12 sps:$4 sm:$0xff]   ;;  %v1155_v57 = vld [vmem:[#allocation5 + $0x288] ss:$12 sps:$4 sm:$0xff]   ;;  %v1161_v61 = vld [vmem:[#allocation5 + $0x270] ss:$12 sps:$4 sm:$0xff]  }
  0x31   :  { %766 = vmatprep.subr.bf16.mxu1 %v1110_v21  ;;  %745 = vmatprep.mubr.bf16.mxu0 %v1308_v53  ;;  %v1158_v59 = vld [vmem:[#allocation5 + $0x274] ss:$12 sps:$4 sm:$0xff]   ;;  %v1162_v62 = vld [vmem:[#allocation5 + $0xdc] ss:$12 sps:$4 sm:$0xff]   ;;  %v1166_v0 = vld [vmem:[#allocation5 + $0xd8] ss:$12 sps:$4 sm:$0xff]  }
  0x32   :  { %788 = vmatprep.mubr.bf16.mxu1 %v1310_v54  ;;  %v1164_v63 = vld [vmem:[#allocation5 + $0x25c] ss:$12 sps:$4 sm:$0xff]   ;;  %v1167_v1 = vld [vmem:[#allocation5 + $0x258] ss:$12 sps:$4 sm:$0xff]   ;;  %v1172_v4 = vld [vmem:[#allocation5 + $0xc0] ss:$12 sps:$4 sm:$0xff]  }
  0x33   :  { %724 = vmatpush1.bf16.msra.mxu0 %v1112_v22  ;;  %v1168_v2 = vld [vmem:[#allocation5 + $0xc4] ss:$12 sps:$4 sm:$0xff]   ;;  %v1173_v5 = vld [vmem:[#allocation5 + $0x240] ss:$12 sps:$4 sm:$0xff]  }
  0x34   :  { %767 = vmatpush1.bf16.msra.mxu1 %v1113_v23  ;;  %725 = vmatprep.subr.bf16.mxu0 %v1114_v24  ;;  %v1170_v3 = vld [vmem:[#allocation5 + $0x244] ss:$12 sps:$4 sm:$0xff]   ;;  %v1182_v20 = vld [vmem:[#allocation5 + $0x140] ss:$12 sps:$4 sm:$0xff]   ;;  %v1186_v24 = vld [vmem:[#allocation5 + $0x128] ss:$12 sps:$4 sm:$0xff]  }
  0x35   :  { %768 = vmatprep.subr.bf16.mxu1 %v1116_v25  ;;  %v44_v6 = vld [vmem:[#allocation2] sm:$0xff]  ;;  %v46_v8 = vld [vmem:[#allocation2 + $0x10] sm:$0xff] }
  0x36   :  { %v48_v7 = vld [vmem:[#allocation2 + $0x20] sm:$0xff]  ;;  %v50_v9 = vld [vmem:[#allocation2 + $0x30] sm:$0xff] }
  0x37   :  { %726 = vmatpush1.bf16.msra.mxu0 %v1118_v26  ;;  %v1174_v10 = vld [vmem:[#allocation5 + $0x170] ss:$12 sps:$4 sm:$0xff]   ;;  %v1314_v13 = vpack.c.bf16 %v48_v7, %v44_v6  ;;  %v1316_v14 = vpack.c.bf16 %v50_v9, %v46_v8  ;;  %v1178_v16 = vld [vmem:[#allocation5 + $0x158] ss:$12 sps:$4 sm:$0xff]   ;;  %v1183_v21 = vld [vmem:[#allocation5 + $0x2c0] ss:$12 sps:$4 sm:$0xff]  }
  0x38   :  { %769 = vmatpush1.bf16.msra.mxu1 %v1119_v27  ;;  %727 = vmatprep.subr.bf16.mxu0 %v1120_v28  ;;  %v1175_v11 = vld [vmem:[#allocation5 + $0x2f0] ss:$12 sps:$4 sm:$0xff]   ;;  %v1179_v17 = vld [vmem:[#allocation5 + $0x2d8] ss:$12 sps:$4 sm:$0xff]   ;;  %v1184_v22 = vld [vmem:[#allocation5 + $0x80] ss:$12 sps:$4 sm:$0xff]  }
  0x39   :  { %770 = vmatprep.subr.bf16.mxu1 %v1122_v29  ;;  %v1176_v12 = vld [vmem:[#allocation5 + $0xb0] ss:$12 sps:$4 sm:$0xff]   ;;  %v1180_v18 = vld [vmem:[#allocation5 + $0x98] ss:$12 sps:$4 sm:$0xff]   ;;  %v1185_v23 = vld [vmem:[#allocation5 + $0x200] ss:$12 sps:$4 sm:$0xff]  }
  0x3a   :  { %v1177_v15 = vld [vmem:[#allocation5 + $0x230] ss:$12 sps:$4 sm:$0xff]   ;;  %v1181_v19 = vld [vmem:[#allocation5 + $0x218] ss:$12 sps:$4 sm:$0xff]   ;;  %v1187_v25 = vld [vmem:[#allocation5 + $0x2a8] ss:$12 sps:$4 sm:$0xff]  }
  0x3b   :  { %728 = vmatpush1.bf16.msra.mxu0 %v1124_v30  ;;  %v1188_v26 = vld [vmem:[#allocation5 + $0x68] ss:$12 sps:$4 sm:$0xff]   ;;  %v1190_v28 = vld [vmem:[#allocation5 + $0x110] ss:$12 sps:$4 sm:$0xff]   ;;  %v184_v47 = vld [vmem:[%s1335_s2] sm:$0x7] }
  0x3c   :  { %771 = vmatpush1.bf16.msra.mxu1 %v1125_v31  ;;  %729 = vmatprep.subr.bf16.mxu0 %v1126_v32  ;;  %v1189_v27 = vld [vmem:[#allocation5 + $0x1e8] ss:$12 sps:$4 sm:$0xff]   ;;  %v1191_v29 = vld [vmem:[#allocation5 + $0x290] ss:$12 sps:$4 sm:$0xff]   ;;  %v1194_v32 = vld [vmem:[#allocation5 + $0xf8] ss:$12 sps:$4 sm:$0xff]  }
  0x3d   :  { %772 = vmatprep.subr.bf16.mxu1 %v1128_v33  ;;  %v1192_v30 = vld [vmem:[#allocation5 + $0x50] ss:$12 sps:$4 sm:$0xff]   ;;  %v1195_v33 = vld [vmem:[#allocation5 + $0x278] ss:$12 sps:$4 sm:$0xff]   ;;  %s1278_s2 = smov [#allocation7]  }
  0x3e   :  { %v1193_v31 = vld [vmem:[#allocation5 + $0x1d0] ss:$12 sps:$4 sm:$0xff]   ;;  %s910_s26 = sshll.u32 %s1278_s2, 4  ;;  %s911_s26 = int_to_ptr.vmem [resolvable:$true] %s910_s26 }
  0x3f   :  { %730 = vmatpush2.bf16.msra.mxu0 %v1130_v34  ;;  %v1196_v34 = vld [vmem:[#allocation5 + $0x38] ss:$12 sps:$4 sm:$0xff]   ;;  %s1246_s27 = scalar_lea.vmem %s911_s26, 384  ;;  %p1251_p11 = scmp.lt.s32.totalorder %s911_s26, %s911_s26 }
  0x40   :  { %773 = vmatpush2.bf16.msra.mxu1 %v1131_v35  ;;  %731 = vmatprep.subr.bf16.mxu0 %v1132_v36  ;;  %v1197_v35 = vld [vmem:[#allocation5 + $0x1b8] ss:$12 sps:$4 sm:$0xff]   ;;  %v1198_v36 = vld [vmem:[#allocation5 + $0xe0] ss:$12 sps:$4 sm:$0xff]   ;;  %p1247_p10 = scmp.ne.s32.totalorder %s911_s26, %s1246_s27  ;;  %p1252_p12 = scmp.lt.s32.totalorder %s1246_s27, %s1246_s27 }
  0x41   :  { %774 = vmatprep.subr.bf16.mxu1 %v1134_v37  ;;  %v1199_v37 = vld [vmem:[#allocation5 + $0x260] ss:$12 sps:$4 sm:$0xff]  }
  0x42   :  { %p1253_p13 = por %p1252_p12, %p1251_p11 }
  0x43   :  { %732 = vmatpush2.bf16.msra.mxu0 %v1136_v38  ;;  %v1200_v38 = vld [vmem:[#allocation5 + $0x20] ss:$12 sps:$4 sm:$0xff]  }
  0x44   :  { %775 = vmatpush2.bf16.msra.mxu1 %v1137_v39  ;;  %733 = vmatprep.subr.bf16.mxu0 %v1138_v40  ;;  %v1201_v39 = vld [vmem:[#allocation5 + $0x1a0] ss:$12 sps:$4 sm:$0xff]   ;;  %v1202_v40 = vld [vmem:[#allocation5 + $0xc8] ss:$12 sps:$4 sm:$0xff]   ;;  %p1254_p0 = pnand %p1253_p13, %p1247_p10 }
  0x45   :  { %776 = vmatprep.subr.bf16.mxu1 %v1140_v41  ;;  %v1203_v41 = vld [vmem:[#allocation5 + $0x248] ss:$12 sps:$4 sm:$0xff]  }
  0x47   :  { %734 = vmatpush2.bf16.msra.mxu0 %v1142_v42  ;;  %v1204_v42 = vld [vmem:[#allocation5 + $0x8] ss:$12 sps:$4 sm:$0xff]  }
  0x48   :  { %777 = vmatpush2.bf16.msra.mxu1 %v1143_v43  ;;  %735 = vmatprep.subr.bf16.mxu0 %v1144_v44  ;;  %v1205_v43 = vld [vmem:[#allocation5 + $0x188] ss:$12 sps:$4 sm:$0xff]   ;;  %v186_v44 = vlaneseq }
  0x49   :  { %778 = vmatprep.subr.bf16.mxu1 %v1146_v45 }
  0x4a   :  { %v187_v45 = vshrl.u32 %v186_v44, 7 }
  0x4b   :  { %736 = vmatpush2.bf16.msra.mxu0 %v1148_v50 }
  0x4c   :  { %779 = vmatpush2.bf16.msra.mxu1 %v1149_v51  ;;  %737 = vmatprep.subr.bf16.mxu0 %v1150_v52  ;;  %v188_v46 = vsub.s32 0, %v187_v45  ;;  %v192_v48 = vsub.s32 1, %v187_v45 }
  0x4d   :  { %780 = vmatprep.subr.bf16.mxu1 %v1152_v55 }
  0x4e   :  { %v189_v49 = vrot.slane %v184_v47, %v188_v46  ;;  %v193_v50 = vrot.slane %v184_v47, %v192_v48 }
  0x4f   :  { %738 = vmatpush2.bf16.msra.mxu0 %v1154_v56 }
  0x50   :  { %781 = vmatpush2.bf16.msra.mxu1 %v1155_v57  ;;  %739 = vmatprep.subr.bf16.mxu0 %v1156_v58 }
  0x51   :  { %782 = vmatprep.subr.bf16.mxu1 %v1158_v59 }
  0x53   :  { %740 = vmatpush2.bf16.msra.mxu0 %v1160_v60 }
  0x54   :  { %783 = vmatpush2.bf16.msra.mxu1 %v1161_v61  ;;  %741 = vmatprep.subr.bf16.mxu0 %v1162_v62 }
  0x55   :  { %784 = vmatprep.subr.bf16.mxu1 %v1164_v63 }
  0x57   :  { %742 = vmatpush2.bf16.msra.mxu0 %v1166_v0 }
  0x58   :  { %785 = vmatpush2.bf16.msra.mxu1 %v1167_v1  ;;  %743 = vmatprep.subr.bf16.mxu0 %v1168_v2 }
  0x59   :  { %786 = vmatprep.subr.bf16.mxu1 %v1170_v3 }
  0x5b   :  { %744 = vmatpush2.bf16.msra.mxu0 %v1172_v4 }
  0x5c   :  { %787 = vmatpush2.bf16.msra.mxu1 %v1173_v5  ;;  %1027 = vmatprep.subr.bf16.mxu0 %v1174_v10  ;;  %v196_v5 = vsub.s32 2, %v187_v45 }
  0x5d   :  { %1049 = vmatprep.subr.bf16.mxu1 %v1175_v11 }
  0x5e   :  { %746 = vmatmul.mubr.bf16.vlgmr.msra.gmra.mxu0 %v1314_v13  ;;  %v197_v8 = vrot.slane %v184_v47, %v196_v5 }
  0x5f   :  { %789 = vmatmul.mubr.bf16.vlgmr.msra.gmra.mxu1 %v1316_v14  ;;  %1028 = vmatpush3.bf16.msra.mxu0 %v1176_v12 }
  0x60   :  { %1050 = vmatpush3.bf16.msra.mxu1 %v1177_v15  ;;  %1029 = vmatprep.subr.bf16.mxu0 %v1178_v16 }
  0x61   :  { %1051 = vmatprep.subr.bf16.mxu1 %v1179_v17  ;;  %831 = vmatprep.mubr.bf16.mxu0 %v1308_v53 }
  0x62   :  { %872 = vmatprep.mubr.bf16.mxu1 %v1310_v54 }
  0x63   :  { %1030 = vmatpush3.bf16.msra.mxu0 %v1180_v18 }
  0x64   :  { %1052 = vmatpush3.bf16.msra.mxu1 %v1181_v19  ;;  %1031 = vmatprep.subr.bf16.mxu0 %v1182_v20 }
  0x65   :  { %1053 = vmatprep.subr.bf16.mxu1 %v1183_v21 }
  0x67   :  { %1032 = vmatpush3.bf16.msra.mxu0 %v1184_v22 }
  0x68   :  { %1054 = vmatpush3.bf16.msra.mxu1 %v1185_v23  ;;  %1033 = vmatprep.subr.bf16.mxu0 %v1186_v24 }
  0x69   :  { %1055 = vmatprep.subr.bf16.mxu1 %v1187_v25 }
  0x6b   :  { %1034 = vmatpush3.bf16.msra.mxu0 %v1188_v26 }
  0x6c   :  { %1056 = vmatpush3.bf16.msra.mxu1 %v1189_v27  ;;  %1035 = vmatprep.subr.bf16.mxu0 %v1190_v28 }
  0x6d   :  { %1057 = vmatprep.subr.bf16.mxu1 %v1191_v29 }
  0x6f   :  { %1036 = vmatpush3.bf16.msra.mxu0 %v1192_v30 }
  0x70   :  { %1058 = vmatpush3.bf16.msra.mxu1 %v1193_v31  ;;  %1037 = vmatprep.subr.bf16.mxu0 %v1194_v32 }
  0x71   :  { %1059 = vmatprep.subr.bf16.mxu1 %v1195_v33 }
  0x73   :  { %1038 = vmatpush3.bf16.msra.mxu0 %v1196_v34 }
  0x74   :  { %1060 = vmatpush3.bf16.msra.mxu1 %v1197_v35  ;;  %1039 = vmatprep.subr.bf16.mxu0 %v1198_v36 }
  0x75   :  { %1061 = vmatprep.subr.bf16.mxu1 %v1199_v37 }
  0x77   :  { %1040 = vmatpush3.bf16.msra.mxu0 %v1200_v38 }
  0x78   :  { %1062 = vmatpush3.bf16.msra.mxu1 %v1201_v39  ;;  %1041 = vmatprep.subr.bf16.mxu0 %v1202_v40 }
  0x79   :  { %1063 = vmatprep.subr.bf16.mxu1 %v1203_v41 }
  0x7b   :  { %1042 = vmatpush3.bf16.msra.mxu0 %v1204_v42 }
  0x7c   :  { %1064 = vmatpush3.bf16.msra.mxu1 %v1205_v43 }
  0x7e   :  { %832 = vmatmul.mubr.bf16.vlgmr.msra.gmra.mxu0 %v1314_v13 }
  0x7f   :  { %873 = vmatmul.mubr.bf16.vlgmr.msra.gmra.mxu1 %v1316_v14 }
 0x11e   :  { %v747_v51 = vpop.f32.mrf.mxu0 }
 0x11f   :  { %v790_v52 = vpop.f32.mrf.mxu1  ;;  %v748_v53 = vadd.f32 %v747_v51, %v189_v49 }
 0x120   :  { %v749_v54 = vpop.f32.mrf.mxu0 }
 0x121   :  { %v792_v55 = vpop.f32.mrf.mxu1  ;;  %v791_v56 = vadd.f32 %v790_v52, %v748_v53  ;;  %v750_v57 = vadd.f32 %v749_v54, %v193_v50 }
 0x122   :  { %v751_v58 = vpop.f32.mrf.mxu0 }
 0x123   :  { %v794_v59 = vpop.f32.mrf.mxu1  ;;  %v793_v60 = vadd.f32 %v792_v55, %v750_v57  ;;  %v752_v61 = vadd.f32 %v751_v58, %v189_v49 }
 0x124   :  { %v753_v62 = vpop.f32.mrf.mxu0 }
 0x125   :  { %v1023_v63 = vpack.c.bf16 %v793_v60, %v791_v56  ;;  %v754_v0 = vadd.f32 %v753_v62, %v193_v50  ;;  %v796_v1 = vpop.f32.mrf.mxu1  ;;  %v795_v2 = vadd.f32 %v794_v59, %v752_v61 }
 0x127   :  { %901 = vst [vmem:[#allocation7] sm:$0xff] %v1023_v63  ;;  %v797_v3 = vadd.f32 %v796_v1, %v754_v0 }
 0x129   :  { %v1025_v4 = vpack.c.bf16 %v797_v3, %v795_v2 }
 0x12b   :  { %903 = vst [vmem:[#allocation7 + $0xc] sm:$0xff] %v1025_v4 }
 0x13e   :  { %v1043_v6 = vpop.f32.mrf.mxu0 }
 0x13f   :  { %v1065_v7 = vpop.f32.mrf.mxu1 }
 0x140   :  { %v1044_v9 = vpop.f32.mrf.mxu0 }
 0x141   :  { %v1066_v10 = vpop.f32.mrf.mxu1  ;;  %v1045_v11 = vadd.f32 %v1044_v9, %v1043_v6 }
 0x142   :  { %v1046_v12 = vpop.f32.mrf.mxu0  ;;  %v1067_v15 = vadd.f32 %v1066_v10, %v1065_v7 }
 0x143   :  { %v1068_v13 = vpop.f32.mrf.mxu1  ;;  %v834_v14 = vadd.f32 %v1045_v11, %v197_v8 }
 0x144   :  { %v1047_v16 = vpop.f32.mrf.mxu0 }
 0x145   :  { %v1069_v17 = vpop.f32.mrf.mxu1  ;;  %v875_v18 = vadd.f32 %v1067_v15, %v834_v14  ;;  %v1048_v19 = vadd.f32 %v1047_v16, %v1046_v12 }
 0x146   :  { %v1070_v22 = vadd.f32 %v1069_v17, %v1068_v13 }
 0x147   :  { %v1024_v20 = vpack.c.bf16 %v875_v18, %v875_v18  ;;  %v837_v21 = vadd.f32 %v1048_v19, %v197_v8 }
 0x149   :  { %902 = vst [vmem:[#allocation7 + $0x8] sm:$0xf] %v1024_v20  ;;  %v878_v23 = vadd.f32 %v1070_v22, %v837_v21 }
 0x14b   :  { %v1026_v24 = vpack.c.bf16 %v878_v23, %v878_v23 }
 0x14d   :  { %904 = vst [vmem:[#allocation7 + $0x14] sm:$0xf] %v1026_v24 }
 0x14e   :  { %1257 = shalt.err (!%p1254_p0)
}
 0x14f   :  { %916 = dma.vmem_to_hbm [thread:$0]  %s911_s26, 384, %s1336_s3, [#allocation4], %s1276_s22, %s1276_s22, %s1277_s23  }
 0x150   :  { %1270 = dma.done.wait [#allocation4], 384  }
 0x151   :  { %1271 = vsyncadd [#allocation4], 4294966912 }
 0x152   :  { %920 = vsyncpa [#allocation3], 1 }
 0x153   :  { %921 = vsyncpa [#allocation6], 1 }
 0x154   :  { %922 = vsyncpa [#allocation4], 1 }

</bundles_post_ra>
